<compile_context>
chip_gen: v7x
topology: tpu7x:2x2x1
jax: 0.10.0
libtpu: 0.0.40
codegen_flags: <defaults>
</compile_context>

<pallas_src>
import functools

import jax
import jax.numpy as jnp
import numpy as np
from jax.experimental import pallas as pl
from jax.experimental.pallas import tpu as pltpu


def char_rnn_kernel(x_ref, wih_ref, whh_ref, b_ref, who_ref, bo_ref, out_ref,
                    *, seq_len):
    SB, _ = x_ref.shape
    B = SB // seq_len
    H = whh_ref.shape[0]

    # Hoisted input projection for ALL timesteps in one matmul (bf16 operands,
    # f32 accumulate):  pre = X @ W_ih^T + (b_ih + b_hh)   -> (S*B, H) f32.
    x_bf = x_ref[...].astype(jnp.bfloat16)
    wih_bf = wih_ref[...].astype(jnp.bfloat16)
    pre_all = (jnp.dot(x_bf, wih_bf, preferred_element_type=jnp.float32)
               + b_ref[...])

    whh_bf = whh_ref[...].astype(jnp.bfloat16)   # loop-invariant RHS, cast once
    h = jnp.zeros((B, H), jnp.float32)           # h_0 = 0 (PyTorch default)

    # Fully unrolled time recurrence (static, small S):
    #   h = tanh(pre[t] + h @ W_hh^T)   -> one bf16 MXU pass + f32 add + tanh.
    for t in range(seq_len):
        pre_t = pre_all[t * B:(t + 1) * B, :]    # static slice, (B, H)
        hh = jnp.dot(h.astype(jnp.bfloat16), whh_bf,
                     preferred_element_type=jnp.float32)
        h = jnp.tanh(pre_t + hh)

    # output = log_softmax(h_T @ W_ho^T + b_o).  W_ho / b_o are lane-padded to
    # a multiple of 128; padded bias = -1e30 so exp() underflows to 0 and the
    # log-sum-exp over the real classes is unchanged.  Kept in f32 (single
    # matmul off the recurrence, accuracy > latency here).
    logits = (jnp.dot(h, who_ref[...], preferred_element_type=jnp.float32)
              + bo_ref[...])                     # (B, O_pad)
    m = jnp.max(logits, axis=1, keepdims=True)
    lse = jnp.log(jnp.sum(jnp.exp(logits - m), axis=1, keepdims=True)) + m
    out_ref[...] = logits - lse


def prepare_params(w_ih, w_hh, b_ih, b_hh, w_ho, b_ho):
    """One-time (model-init) layout prep: transpose + lane-pad the weights."""
    H = w_ih.shape[0]
    O = w_ho.shape[0]
    O_pad = ((O + 127) // 128) * 128             # lane-dense output store

    wih_t = jnp.asarray(w_ih, jnp.float32).T                       # (I, H)
    whh_t = jnp.asarray(w_hh, jnp.float32).T                       # (H, H)
    b_rnn = (jnp.asarray(b_ih, jnp.float32)
             + jnp.asarray(b_hh, jnp.float32)).reshape(1, H)       # (1, H)
    who_t = jnp.zeros((H, O_pad), jnp.float32).at[:, :O].set(
        jnp.asarray(w_ho, jnp.float32).T)                          # (H, O_pad)
    bo = jnp.full((1, O_pad), -1e30, jnp.float32).at[:, :O].set(
        jnp.asarray(b_ho, jnp.float32))                            # (1, O_pad)

    return wih_t, whh_t, b_rnn, who_t, bo, O


@functools.partial(jax.jit, static_argnames=("num_classes",))
def char_rnn_forward(line_tensor, wih_t, whh_t, b_rnn, who_t, bo, *,
                     num_classes):
    """line_tensor: (S, B, I) f32.  Returns log-probs (B, num_classes) f32."""
    S, B, I = line_tensor.shape
    O_pad = who_t.shape[1]
    x2d = line_tensor.reshape(S * B, I)          # (S*B, I), fused under jit

    vmem_spec = pl.BlockSpec(memory_space=pltpu.MemorySpace.VMEM)
    out = pl.pallas_call(
        functools.partial(char_rnn_kernel, seq_len=S),
        out_shape=jax.ShapeDtypeStruct((B, O_pad), jnp.float32),
        in_specs=[vmem_spec] * 6,
        out_specs=vmem_spec,
    )(x2d, wih_t, whh_t, b_rnn, who_t, bo)

    return out[:, :num_classes]


def char_rnn_reference(line_tensor, w_ih, w_hh, b_ih, b_hh, w_ho, b_ho):
    S, B, I = line_tensor.shape
    H = w_ih.shape[0]
    h = jnp.zeros((B, H), jnp.float32)
    for t in range(S):
        h = jnp.tanh(line_tensor[t] @ w_ih.T + b_ih + h @ w_hh.T + b_hh)
    logits = h @ w_ho.T + b_ho
    return jax.nn.log_softmax(logits, axis=1)


if __name__ == "__main__":
    # Small shapes consistent with the module's forward:
    #   seq=8, batch=8, input_size=64, hidden_size=32, output_size=16
    # (Batch could be raised to ~128/256 nearly for free — recurrence latency,
    #  not MXU occupancy, is the bottleneck — kept small per the spec.)
    S, B, I, H, O = 8, 8, 64, 32, 16

    key = jax.random.PRNGKey(0)
    ks = jax.random.split(key, 7)
    line_tensor = jax.random.normal(ks[0], (S, B, I), jnp.float32)

    # Deterministic parameter init (uniform +-1/sqrt(H), like PyTorch nn.RNN).
    bound = 1.0 / np.sqrt(H)
    w_ih = jax.random.uniform(ks[1], (H, I), jnp.float32, -bound, bound)
    w_hh = jax.random.uniform(ks[2], (H, H), jnp.float32, -bound, bound)
    b_ih = jax.random.uniform(ks[3], (H,), jnp.float32, -bound, bound)
    b_hh = jax.random.uniform(ks[4], (H,), jnp.float32, -bound, bound)
    w_ho = jax.random.uniform(ks[5], (O, H), jnp.float32, -bound, bound)
    b_ho = jax.random.uniform(ks[6], (O,), jnp.float32, -bound, bound)

    # One-time prep (model init), then the jitted, zero-prep per-call forward.
    wih_t, whh_t, b_rnn, who_t, bo, n_classes = prepare_params(
        w_ih, w_hh, b_ih, b_hh, w_ho, b_ho)

    out = char_rnn_forward(line_tensor, wih_t, whh_t, b_rnn, who_t, bo,
                           num_classes=n_classes)
    out = jax.block_until_ready(out)

    ref = char_rnn_reference(line_tensor, w_ih, w_hh, b_ih, b_hh, w_ho, b_ho)
    # Tolerance relaxed vs. pure-f32: bf16 MXU operands accumulate rounding
    # over the S-step recurrence (observed error ~1e-3, bound well under 3e-2).
    np.testing.assert_allclose(np.asarray(out), np.asarray(ref),
                               rtol=3e-2, atol=3e-2)
    print("KERNEL_OK")
</pallas_src>

<mosaic_0001>
module attributes {stable_mosaic.version = 11 : i64} {
  func.func @char_rnn_kernel(%arg0: memref<64x64xf32, #tpu.memory_space<vmem>>, %arg1: memref<64x32xf32, #tpu.memory_space<vmem>>, %arg2: memref<32x32xf32, #tpu.memory_space<vmem>>, %arg3: memref<1x32xf32, #tpu.memory_space<vmem>>, %arg4: memref<32x128xf32, #tpu.memory_space<vmem>>, %arg5: memref<1x128xf32, #tpu.memory_space<vmem>>, %arg6: memref<8x128xf32, #tpu.memory_space<vmem>>) attributes {dimension_semantics = [], scalar_prefetch = 0 : i64, scratch_operands = 0 : i64, tpu.core_type = #tpu.core_type<tc>} {
    %c0 = arith.constant 0 : index
    %c0_0 = arith.constant 0 : index
    %0 = vector.load %arg0[%c0, %c0_0] : memref<64x64xf32, #tpu.memory_space<vmem>>, vector<64x64xf32>
    %1 = arith.truncf %0 : vector<64x64xf32> to vector<64x64xbf16>
    %c0_1 = arith.constant 0 : index
    %c0_2 = arith.constant 0 : index
    %2 = vector.load %arg1[%c0_1, %c0_2] : memref<64x32xf32, #tpu.memory_space<vmem>>, vector<64x32xf32>
    %3 = arith.truncf %2 : vector<64x32xf32> to vector<64x32xbf16>
    %cst = arith.constant dense<0.000000e+00> : vector<64x32xf32>
    %4 = tpu.matmul %1, %3, %cst {dimension_numbers = #tpu.dot_dimension_numbers<[1], [0], [0], [1], [0, 0, 1, 1], [], []>} : vector<64x64xbf16>, vector<64x32xbf16>, vector<64x32xf32> -> vector<64x32xf32>
    %c0_3 = arith.constant 0 : index
    %c0_4 = arith.constant 0 : index
    %5 = vector.load %arg3[%c0_3, %c0_4] : memref<1x32xf32, #tpu.memory_space<vmem>>, vector<1x32xf32>
    %6 = vector.broadcast %5 : vector<1x32xf32> to vector<64x32xf32>
    %7 = arith.addf %4, %6 : vector<64x32xf32>
    %c0_5 = arith.constant 0 : index
    %c0_6 = arith.constant 0 : index
    %8 = vector.load %arg2[%c0_5, %c0_6] : memref<32x32xf32, #tpu.memory_space<vmem>>, vector<32x32xf32>
    %9 = arith.truncf %8 : vector<32x32xf32> to vector<32x32xbf16>
    %cst_7 = arith.constant 0.000000e+00 : f32
    %10 = vector.broadcast %cst_7 : f32 to vector<8x32xf32>
    %11 = vector.extract_strided_slice %7 {offsets = [0, 0], sizes = [8, 32], strides = [1, 1]} : vector<64x32xf32> to vector<8x32xf32>
    %12 = arith.truncf %10 : vector<8x32xf32> to vector<8x32xbf16>
    %cst_8 = arith.constant dense<0.000000e+00> : vector<8x32xf32>
    %13 = tpu.matmul %12, %9, %cst_8 {dimension_numbers = #tpu.dot_dimension_numbers<[1], [0], [0], [1], [0, 0, 1, 1], [], []>} : vector<8x32xbf16>, vector<32x32xbf16>, vector<8x32xf32> -> vector<8x32xf32>
    %14 = arith.addf %11, %13 : vector<8x32xf32>
    %15 = math.tanh %14 : vector<8x32xf32>
    %16 = vector.extract_strided_slice %7 {offsets = [8, 0], sizes = [8, 32], strides = [1, 1]} : vector<64x32xf32> to vector<8x32xf32>
    %17 = arith.truncf %15 : vector<8x32xf32> to vector<8x32xbf16>
    %cst_9 = arith.constant dense<0.000000e+00> : vector<8x32xf32>
    %18 = tpu.matmul %17, %9, %cst_9 {dimension_numbers = #tpu.dot_dimension_numbers<[1], [0], [0], [1], [0, 0, 1, 1], [], []>} : vector<8x32xbf16>, vector<32x32xbf16>, vector<8x32xf32> -> vector<8x32xf32>
    %19 = arith.addf %16, %18 : vector<8x32xf32>
    %20 = math.tanh %19 : vector<8x32xf32>
    %21 = vector.extract_strided_slice %7 {offsets = [16, 0], sizes = [8, 32], strides = [1, 1]} : vector<64x32xf32> to vector<8x32xf32>
    %22 = arith.truncf %20 : vector<8x32xf32> to vector<8x32xbf16>
    %cst_10 = arith.constant dense<0.000000e+00> : vector<8x32xf32>
    %23 = tpu.matmul %22, %9, %cst_10 {dimension_numbers = #tpu.dot_dimension_numbers<[1], [0], [0], [1], [0, 0, 1, 1], [], []>} : vector<8x32xbf16>, vector<32x32xbf16>, vector<8x32xf32> -> vector<8x32xf32>
    %24 = arith.addf %21, %23 : vector<8x32xf32>
    %25 = math.tanh %24 : vector<8x32xf32>
    %26 = vector.extract_strided_slice %7 {offsets = [24, 0], sizes = [8, 32], strides = [1, 1]} : vector<64x32xf32> to vector<8x32xf32>
    %27 = arith.truncf %25 : vector<8x32xf32> to vector<8x32xbf16>
    %cst_11 = arith.constant dense<0.000000e+00> : vector<8x32xf32>
    %28 = tpu.matmul %27, %9, %cst_11 {dimension_numbers = #tpu.dot_dimension_numbers<[1], [0], [0], [1], [0, 0, 1, 1], [], []>} : vector<8x32xbf16>, vector<32x32xbf16>, vector<8x32xf32> -> vector<8x32xf32>
    %29 = arith.addf %26, %28 : vector<8x32xf32>
    %30 = math.tanh %29 : vector<8x32xf32>
    %31 = vector.extract_strided_slice %7 {offsets = [32, 0], sizes = [8, 32], strides = [1, 1]} : vector<64x32xf32> to vector<8x32xf32>
    %32 = arith.truncf %30 : vector<8x32xf32> to vector<8x32xbf16>
    %cst_12 = arith.constant dense<0.000000e+00> : vector<8x32xf32>
    %33 = tpu.matmul %32, %9, %cst_12 {dimension_numbers = #tpu.dot_dimension_numbers<[1], [0], [0], [1], [0, 0, 1, 1], [], []>} : vector<8x32xbf16>, vector<32x32xbf16>, vector<8x32xf32> -> vector<8x32xf32>
    %34 = arith.addf %31, %33 : vector<8x32xf32>
    %35 = math.tanh %34 : vector<8x32xf32>
    %36 = vector.extract_strided_slice %7 {offsets = [40, 0], sizes = [8, 32], strides = [1, 1]} : vector<64x32xf32> to vector<8x32xf32>
    %37 = arith.truncf %35 : vector<8x32xf32> to vector<8x32xbf16>
    %cst_13 = arith.constant dense<0.000000e+00> : vector<8x32xf32>
    %38 = tpu.matmul %37, %9, %cst_13 {dimension_numbers = #tpu.dot_dimension_numbers<[1], [0], [0], [1], [0, 0, 1, 1], [], []>} : vector<8x32xbf16>, vector<32x32xbf16>, vector<8x32xf32> -> vector<8x32xf32>
    %39 = arith.addf %36, %38 : vector<8x32xf32>
    %40 = math.tanh %39 : vector<8x32xf32>
    %41 = vector.extract_strided_slice %7 {offsets = [48, 0], sizes = [8, 32], strides = [1, 1]} : vector<64x32xf32> to vector<8x32xf32>
    %42 = arith.truncf %40 : vector<8x32xf32> to vector<8x32xbf16>
    %cst_14 = arith.constant dense<0.000000e+00> : vector<8x32xf32>
    %43 = tpu.matmul %42, %9, %cst_14 {dimension_numbers = #tpu.dot_dimension_numbers<[1], [0], [0], [1], [0, 0, 1, 1], [], []>} : vector<8x32xbf16>, vector<32x32xbf16>, vector<8x32xf32> -> vector<8x32xf32>
    %44 = arith.addf %41, %43 : vector<8x32xf32>
    %45 = math.tanh %44 : vector<8x32xf32>
    %46 = vector.extract_strided_slice %7 {offsets = [56, 0], sizes = [8, 32], strides = [1, 1]} : vector<64x32xf32> to vector<8x32xf32>
    %47 = arith.truncf %45 : vector<8x32xf32> to vector<8x32xbf16>
    %cst_15 = arith.constant dense<0.000000e+00> : vector<8x32xf32>
    %48 = tpu.matmul %47, %9, %cst_15 {dimension_numbers = #tpu.dot_dimension_numbers<[1], [0], [0], [1], [0, 0, 1, 1], [], []>} : vector<8x32xbf16>, vector<32x32xbf16>, vector<8x32xf32> -> vector<8x32xf32>
    %49 = arith.addf %46, %48 : vector<8x32xf32>
    %50 = math.tanh %49 : vector<8x32xf32>
    %c0_16 = arith.constant 0 : index
    %c0_17 = arith.constant 0 : index
    %51 = vector.load %arg4[%c0_16, %c0_17] : memref<32x128xf32, #tpu.memory_space<vmem>>, vector<32x128xf32>
    %cst_18 = arith.constant dense<0.000000e+00> : vector<8x128xf32>
    %52 = tpu.matmul %50, %51, %cst_18 {dimension_numbers = #tpu.dot_dimension_numbers<[1], [0], [0], [1], [0, 0, 1, 1], [], []>} : vector<8x32xf32>, vector<32x128xf32>, vector<8x128xf32> -> vector<8x128xf32>
    %c0_19 = arith.constant 0 : index
    %c0_20 = arith.constant 0 : index
    %53 = vector.load %arg5[%c0_19, %c0_20] : memref<1x128xf32, #tpu.memory_space<vmem>>, vector<1x128xf32>
    %54 = vector.broadcast %53 : vector<1x128xf32> to vector<8x128xf32>
    %55 = arith.addf %52, %54 : vector<8x128xf32>
    %cst_21 = arith.constant dense<0xFF800000> : vector<8xf32>
    %56 = vector.multi_reduction <maximumf>, %55, %cst_21 [1] : vector<8x128xf32> to vector<8xf32>
    %57 = vector.shape_cast %56 : vector<8xf32> to vector<8x1xf32>
    %58 = vector.broadcast %57 : vector<8x1xf32> to vector<8x128xf32>
    %59 = arith.subf %55, %58 : vector<8x128xf32>
    %60 = math.exp %59 : vector<8x128xf32>
    %cst_22 = arith.constant dense<0.000000e+00> : vector<8xf32>
    %61 = vector.multi_reduction <add>, %60, %cst_22 [1] : vector<8x128xf32> to vector<8xf32>
    %62 = vector.shape_cast %61 : vector<8xf32> to vector<8x1xf32>
    %63 = math.log %62 : vector<8x1xf32>
    %64 = arith.addf %63, %57 : vector<8x1xf32>
    %65 = vector.broadcast %64 : vector<8x1xf32> to vector<8x128xf32>
    %66 = arith.subf %55, %65 : vector<8x128xf32>
    %c0_23 = arith.constant 0 : index
    %c0_24 = arith.constant 0 : index
    %67 = vector.load %arg6[%c0_23, %c0_24] : memref<8x128xf32, #tpu.memory_space<vmem>>, vector<8x128xf32>
    tpu.vector_store %arg6[%c0_23, %c0_24], %66 {strides = array<i32>} : memref<8x128xf32, #tpu.memory_space<vmem>>, vector<8x128xf32>,
    return
  }
}

</mosaic_0001>

<bundles_post_ra>
// kernel: char_rnn_forward.1
= control target key start
LH: loop header
LB: loop body
LE: loop exit
PB: predicated region body
PF: predicated region fallthrough
CT: control target
= control target key end

     0   :  { %11 = vsyncpa [#allocation3], 0  ;;  %s1066_s0 = inlined_call_operand.vmem [shape: f32[64,64], index: 0, kind: input, shape index: {}]   ;;  %s1067_s1 = inlined_call_operand.vmem [shape: f32[64,32], index: 1, kind: input, shape index: {}]   ;;  %s1068_s2 = inlined_call_operand.vmem [shape: f32[32,32], index: 2, kind: input, shape index: {}]   ;;  %s1069_s3 = inlined_call_operand.vmem [shape: f32[1,32], index: 3, kind: input, shape index: {}]   ;;  %s1070_s4 = inlined_call_operand.hbm [shape: f32[32,128], index: 4, kind: input, shape index: {}]   ;;  %s1071_s5 = inlined_call_operand.vmem [shape: f32[1,128], index: 5, kind: input, shape index: {}]   ;;  %s1072_s6 = inlined_call_operand.hbm [shape: f32[8,128], index: 6, kind: output, shape index: {}]  }
   0x1   :  { %12 = vsyncpa [#allocation4], 0  ;;  %s857_s21 = smov [#allocation2]   ;;  %s809_s25 = scalar_lea.hbm %s1070_s4, 512 }
   0x2   :  { %s26_s22 = sshll.u32 %s857_s21, 4  ;;  %p810_p0 = scmp.ne.s32.totalorder %s1070_s4, %s809_s25  ;;  %s27_s22 = int_to_ptr.vmem [resolvable:$true] %s26_s22 }
   0x3   :  { %p813_p1 = scmp.lt.u32.totalorder %s809_s25, %s1070_s4 }
   0x5   :  { %p815_p2 = pnand %p813_p1, %p810_p0 }
   0x7   :  { %818 = shalt.err (!%p815_p2)
}
   0x8   :  { %s819_s30 = scalar_lea.vmem %s27_s22, 512  ;;  %p824_p4 = scmp.lt.s32.totalorder %s27_s22, %s27_s22 }
   0x9   :  { %p820_p3 = scmp.ne.s32.totalorder %s27_s22, %s819_s30  ;;  %p825_p5 = scmp.lt.s32.totalorder %s819_s30, %s819_s30 }
   0xb   :  { %p826_p6 = por %p825_p5, %p824_p4 }
   0xd   :  { %p827_p7 = pnand %p826_p6, %p820_p3 }
   0xf   :  { %830 = shalt.err (!%p827_p7)
}
  0x10   :  { %s858_s7 = smov 128   ;;  %s859_s8 = smov 8  }
  0x11   :  { %32 = dma.hbm_to_vmem [thread:$0]  %s1070_s4, 512, %s27_s22, [#allocation3], %s858_s7, %s858_s7, %s859_s8  }
  0x12   :  { %853 = dma.done.wait [#allocation3], 512  }
  0x13   :  { %854 = vsyncadd [#allocation3], 4294966784  ;;  %v860_v0 = vmov 0.0   ;;  %vm861_vm0 = vmmov 0   ;;  %v51_v1 = vld [vmem:[%s1067_s1] sm:$0xff]  ;;  %v52_v2 = vld [vmem:[%s1067_s1 + $0x8] sm:$0xff] }
  0x14   :  { %700 = vmatprep.subr.bf16.mxu1 %v860_v0  ;;  %704 = vmatprep.mubr.msk.bf16.mxu1 %vm861_vm0, %v860_v0  ;;  %v53_v3 = vld [vmem:[%s1067_s1 + $0x10] sm:$0xff]  ;;  %v59_v4 = vpack.c.bf16 %v52_v2, %v51_v1  ;;  %v54_v5 = vld [vmem:[%s1067_s1 + $0x18] sm:$0xff]  ;;  %v55_v6 = vld [vmem:[%s1067_s1 + $0x20] sm:$0xff]  ;;  %vm70_vm1 = vcmask 523264   ;;  %v862_v24 = vmov 0   ;;  %vm154_vm2 = vcmask 261120  }
  0x15   :  { %v60_v7 = vpack.c.bf16 %v54_v5, %v53_v3  ;;  %v56_v8 = vld [vmem:[%s1067_s1 + $0x28] sm:$0xff]  ;;  %v148_v9 = vld [vmem:[%s1068_s2] sm:$0xff]  ;;  %v150_v12 = vld [vmem:[%s1068_s2 + $0x10] sm:$0xff]  ;;  %s864_s25 = smov [#allocation5]  }
  0x16   :  { %v149_v10 = vld [vmem:[%s1068_s2 + $0x8] sm:$0xff]  ;;  %684 = vmatprep.subr.bf16.mxu0 %v59_v4  ;;  %v151_v13 = vld [vmem:[%s1068_s2 + $0x18] sm:$0xff]  ;;  %v39_v14 = vld [vmem:[%s1066_s0] sm:$0xff]  ;;  %v61_v16 = vpack.c.bf16 %v56_v8, %v55_v6  ;;  %s624_s26 = sshll.u32 %s864_s25, 4  ;;  %s625_s26 = int_to_ptr.vmem [resolvable:$true] %s624_s26 }
  0x17   :  { %v939_v11 = vpack.c.bf16 %v149_v10, %v148_v9  ;;  %685 = vmatpush3.bf16.msra.mxu0 %v59_v4  ;;  %v40_v15 = vld [vmem:[%s1066_s0 + $0x8] sm:$0xff]  ;;  %v954_v17 = vpack.c.bf16 %v151_v13, %v150_v12  ;;  %v57_v19 = vld [vmem:[%s1067_s1 + $0x30] sm:$0xff]  ;;  %v58_v20 = vld [vmem:[%s1067_s1 + $0x38] sm:$0xff]  ;;  %p836_p9 = scmp.lt.s32.totalorder %s625_s26, %s625_s26 }
  0x18   :  { %686 = vmatprep.subr.bf16.mxu0 %v60_v7  ;;  %v47_v18 = vpack.c.bf16 %v40_v15, %v39_v14  ;;  %v62_v21 = vpack.c.bf16 %v58_v20, %v57_v19  ;;  %v41_v22 = vld [vmem:[%s1066_s0 + $0x10] sm:$0xff]  ;;  %v42_v23 = vld [vmem:[%s1066_s0 + $0x18] sm:$0xff]  ;;  %v987_v30 = vld [vmem:[%s1069_s3] ss:$0 sm:$0xff] }
  0x19   :  { %701 = vmatpush3.bf16.msra.mxu1 %v939_v11  ;;  %v48_v25 = vpack.c.bf16 %v42_v23, %v41_v22  ;;  %v43_v47 = vld [vmem:[%s1066_s0 + $0x20] sm:$0xff]  ;;  %v44_v48 = vld [vmem:[%s1066_s0 + $0x28] sm:$0xff]  ;;  %v45_v50 = vld [vmem:[%s1066_s0 + $0x30] sm:$0xff] }
  0x1a   :  { %702 = vmatprep.subr.bf16.mxu1 %v860_v0  ;;  %692 = vmatprep.mubr.msk.bf16.mxu0 %vm70_vm1, %v47_v18  ;;  %v49_v49 = vpack.c.bf16 %v44_v48, %v43_v47  ;;  %v46_v51 = vld [vmem:[%s1066_s0 + $0x38] sm:$0xff]  ;;  %v645_v48 = vld [vmem:[%s1071_s5] ss:$0 sm:$0xff]  ;;  %s831_s5 = scalar_lea.vmem %s625_s26, 128 }
  0x1b   :  { %687 = vmatpush3.bf16.msra.mxu0 %v60_v7  ;;  %v50_v52 = vpack.c.bf16 %v46_v51, %v45_v50  ;;  %p832_p8 = scmp.ne.s32.totalorder %s625_s26, %s831_s5  ;;  %p837_p10 = scmp.lt.s32.totalorder %s831_s5, %s831_s5 }
  0x1c   :  { %688 = vmatprep.subr.bf16.mxu0 %v61_v16 }
  0x1d   :  { %703 = vmatpush3.bf16.msra.mxu1 %v954_v17  ;;  %p838_p11 = por %p837_p10, %p836_p9 }
  0x1e   :  { %708 = vmatprep.subr.bf16.mxu1 %v860_v0 }
  0x1f   :  { %689 = vmatpush3.bf16.msra.mxu0 %v61_v16  ;;  %p839_p12 = pnand %p838_p11, %p832_p8 }
  0x20   :  { %705 = vmatmul.mubr.bf16.vlgmr.msra.gmra.mrb[0].mxu1 %v862_v24  ;;  %690 = vmatprep.subr.bf16.mxu0 %v62_v21 }
  0x21   :  { %709 = vmatpush3.bf16.msra.mxu1 %v939_v11  ;;  %712 = vmatprep.mubr.msk.bf16.mxu1 %vm861_vm0, %v860_v0 }
  0x22   :  { %710 = vmatprep.subr.bf16.mxu1 %v860_v0 }
  0x23   :  { %691 = vmatpush3.bf16.msra.mxu0 %v62_v21 }
  0x24   :  { %724 = vmatprep.subr.bf16.mxu0 %v860_v0 }
  0x25   :  { %711 = vmatpush3.bf16.msra.mxu1 %v954_v17 }
  0x26   :  { %716 = vmatprep.subr.bf16.mxu1 %v860_v0  ;;  %693 = vmatmul.mubr.msk.bf16.vlgmr.msra.gmra.mrb[0].mxu0 %vm70_vm1, %v48_v25 }
  0x27   :  { %725 = vmatpush3.bf16.msra.mxu0 %v939_v11  ;;  %696 = vmatprep.mubr.msk.bf16.mxu0 %vm70_vm1, %v49_v49 }
  0x28   :  { %726 = vmatprep.subr.bf16.mxu0 %v860_v0 }
  0x2b   :  { %727 = vmatpush3.bf16.msra.mxu0 %v954_v17 }
  0x2c   :  { %740 = vmatprep.subr.bf16.mxu0 %v860_v0 }
  0x2e   :  { %697 = vmatmul.mubr.msk.bf16.gmra.mrb[4].mxu0 %vm70_vm1, %v50_v52 }
  0x2f   :  { %728 = vmatprep.mubr.msk.bf16.mxu0 %vm861_vm0, %v860_v0 }
  0xf3   :  { %v192_v26 = vpop.f32.mrb[0].mxu1 }
  0xf4   :  { %v706_v27 = vpop.f32.mrb[1].mxu1 }
  0xf5   :  { %v195_v28 = vpop.f32.mrb[2].mxu1 }
  0xf6   :  { %v707_v29 = vpop.f32.mrb[3].mxu1 }
  0xf9   :  { %v694_v31 = vpop.f32.mrb[0].mxu0 }
  0xfa   :  { %v117_v32 = vpop.f32.mrb[1].mxu0  ;;  %v126_v53 = vadd.f32 %v694_v31, %v987_v30 }
  0xfb   :  { %v118_v33 = vadd.f32 %v987_v30, %v117_v32  ;;  %v695_v34 = vpop.f32.mrb[2].mxu0 }
  0xfc   :  { %v120_v35 = vpop.f32.mrb[3].mxu0  ;;  %v129_v2 = vadd.f32 %v695_v34, %v987_v30 }
  0xfd   :  { %v198_v36 = vadd.f32 %v192_v26, %v118_v33  ;;  %v121_v39 = vadd.f32 %v987_v30, %v120_v35  ;;  %v522_v35 = vld [vmem:[#allocation2] sm:$0xff] }
  0xff   :  { %789 = vtanh.f32 %v198_v36  ;;  %v523_v36 = vld [vmem:[#allocation2 + $0x8] sm:$0xff] }
 0x101   :  { %v698_v61 = vpop.f32.mrb[4].mxu0 }
 0x102   :  { %v133_v62 = vpop.f32.mrb[5].mxu0 }
 0x103   :  { %v699_v63 = vpop.f32.mrb[6].mxu0  ;;  %v134_v10 = vadd.f32 %v987_v30, %v133_v62 }
 0x104   :  { %v136_v1 = vpop.f32.mrb[7].mxu0 }
 0x105   :  { %v137_v20 = vadd.f32 %v987_v30, %v136_v1 }
 0x109   :  { %v790_v37 = vpop.eup %789 }
 0x10a   :  { %v200_v38 = vpack.c.bf16 %v790_v37, %v790_v37  ;;  %v524_v37 = vld [vmem:[#allocation2 + $0x10] sm:$0xff] }
 0x10c   :  { %713 = vmatmul.mubr.msk.bf16.vlgmr.msra.gmra.mrb[4].mxu1 %vm154_vm2, %v200_v38  ;;  %v863_v38 = vmov 0.0|0.0  }
 0x10d   :  { %717 = vmatpush3.bf16.msra.mxu1 %v939_v11  ;;  %720 = vmatprep.mubr.msk.bf16.mxu1 %vm861_vm0, %v860_v0 }
 0x10e   :  { %718 = vmatprep.subr.bf16.mxu1 %v860_v0 }
 0x111   :  { %719 = vmatpush3.bf16.msra.mxu1 %v954_v17 }
 0x112   :  { %732 = vmatprep.subr.bf16.mxu1 %v860_v0 }
 0x1df   :  { %v238_v40 = vpop.f32.mrb[4].mxu1 }
 0x1e0   :  { %v244_v41 = vadd.f32 %v238_v40, %v121_v39  ;;  %v714_v42 = vpop.f32.mrb[5].mxu1  ;;  %v776_v39 = vpack.c.bf16 %v523_v36, %v522_v35  ;;  %v525_v40 = vld [vmem:[#allocation2 + $0x18] sm:$0xff] }
 0x1e1   :  { %v241_v43 = vpop.f32.mrb[6].mxu1 }
 0x1e2   :  { %791 = vtanh.f32 %v244_v41  ;;  %v715_v44 = vpop.f32.mrb[7].mxu1  ;;  %v145_v41 = vadd.f32 %v699_v63, %v987_v30 }
 0x1ec   :  { %v792_v45 = vpop.eup %791 }
 0x1ed   :  { %v246_v46 = vpack.c.bf16 %v792_v45, %v792_v45 }
 0x1ef   :  { %721 = vmatmul.mubr.msk.bf16.vlgmr.msra.gmra.mrb[8].mxu1 %vm154_vm2, %v246_v46 }
 0x1f0   :  { %733 = vmatpush3.bf16.msra.mxu1 %v939_v11  ;;  %736 = vmatprep.mubr.msk.bf16.mxu1 %vm861_vm0, %v860_v0 }
 0x1f1   :  { %734 = vmatprep.subr.bf16.mxu1 %v860_v0 }
 0x1f4   :  { %735 = vmatpush3.bf16.msra.mxu1 %v954_v17 }
 0x1f5   :  { %748 = vmatprep.subr.bf16.mxu1 %v860_v0 }
 0x2c2   :  { %v284_v54 = vpop.f32.mrb[8].mxu1 }
 0x2c3   :  { %v290_v55 = vadd.f32 %v284_v54, %v126_v53  ;;  %v722_v56 = vpop.f32.mrb[9].mxu1 }
 0x2c4   :  { %v287_v57 = vpop.f32.mrb[10].mxu1 }
 0x2c5   :  { %793 = vtanh.f32 %v290_v55  ;;  %v723_v58 = vpop.f32.mrb[11].mxu1 }
 0x2cf   :  { %v794_v59 = vpop.eup %793 }
 0x2d0   :  { %v292_v60 = vpack.c.bf16 %v794_v59, %v794_v59 }
 0x2d2   :  { %729 = vmatmul.mubr.msk.bf16.vlgmr.msra.gmra.mrb[8].mxu0 %vm154_vm2, %v292_v60 }
 0x2d3   :  { %741 = vmatpush3.bf16.msra.mxu0 %v939_v11  ;;  %744 = vmatprep.mubr.msk.bf16.mxu0 %vm861_vm0, %v860_v0 }
 0x2d4   :  { %742 = vmatprep.subr.bf16.mxu0 %v860_v0 }
 0x2d7   :  { %743 = vmatpush3.bf16.msra.mxu0 %v954_v17 }
 0x2d8   :  { %756 = vmatprep.subr.bf16.mxu0 %v860_v0 }
 0x3a5   :  { %v330_v3 = vpop.f32.mrb[8].mxu0 }
 0x3a6   :  { %v336_v4 = vadd.f32 %v330_v3, %v129_v2  ;;  %v730_v5 = vpop.f32.mrb[9].mxu0 }
 0x3a7   :  { %v333_v6 = vpop.f32.mrb[10].mxu0 }
 0x3a8   :  { %795 = vtanh.f32 %v336_v4  ;;  %v731_v7 = vpop.f32.mrb[11].mxu0 }
 0x3b2   :  { %v796_v8 = vpop.eup %795 }
 0x3b3   :  { %v338_v9 = vpack.c.bf16 %v796_v8, %v796_v8 }
 0x3b5   :  { %737 = vmatmul.mubr.msk.bf16.vlgmr.msra.gmra.mrb[12].mxu1 %vm154_vm2, %v338_v9 }
 0x3b6   :  { %749 = vmatpush3.bf16.msra.mxu1 %v939_v11  ;;  %752 = vmatprep.mubr.msk.bf16.mxu1 %vm861_vm0, %v860_v0 }
 0x3b7   :  { %750 = vmatprep.subr.bf16.mxu1 %v860_v0 }
 0x3ba   :  { %751 = vmatpush3.bf16.msra.mxu1 %v954_v17 }
 0x3bb   :  { %775 = vmatprep.subr.bf16.mxu1 %v863_v38 }
 0x488   :  { %v376_v12 = vpop.f32.mrb[12].mxu1 }
 0x489   :  { %v382_v13 = vadd.f32 %v376_v12, %v134_v10  ;;  %v738_v14 = vpop.f32.mrb[13].mxu1 }
 0x48a   :  { %v379_v15 = vpop.f32.mrb[14].mxu1 }
 0x48b   :  { %797 = vtanh.f32 %v382_v13  ;;  %v739_v16 = vpop.f32.mrb[15].mxu1 }
 0x495   :  { %v798_v18 = vpop.eup %797 }
 0x496   :  { %v384_v19 = vpack.c.bf16 %v798_v18, %v798_v18 }
 0x498   :  { %745 = vmatmul.mubr.msk.bf16.vlgmr.msra.gmra.mrb[12].mxu0 %vm154_vm2, %v384_v19 }
 0x499   :  { %757 = vmatpush3.bf16.msra.mxu0 %v939_v11  ;;  %760 = vmatprep.mubr.msk.bf16.mxu0 %vm861_vm0, %v860_v0  ;;  %v142_v11 = vadd.f32 %v698_v61, %v987_v30 }
 0x49a   :  { %758 = vmatprep.subr.bf16.mxu0 %v860_v0 }
 0x49d   :  { %759 = vmatpush3.bf16.msra.mxu0 %v954_v17 }
 0x56b   :  { %v422_v21 = vpop.f32.mrb[12].mxu0 }
 0x56c   :  { %v428_v22 = vadd.f32 %v422_v21, %v137_v20  ;;  %v746_v23 = vpop.f32.mrb[13].mxu0 }
 0x56d   :  { %v425_v24 = vpop.f32.mrb[14].mxu0 }
 0x56e   :  { %799 = vtanh.f32 %v428_v22  ;;  %v747_v25 = vpop.f32.mrb[15].mxu0 }
 0x578   :  { %v800_v26 = vpop.eup %799 }
 0x579   :  { %v430_v27 = vpack.c.bf16 %v800_v26, %v800_v26 }
 0x57b   :  { %753 = vmatmul.mubr.msk.bf16.vlgmr.msra.gmra.mrb[16].mxu1 %vm154_vm2, %v430_v27 }
 0x57c   :  { %772 = vmatprep.mubr.msk.f32.mxu1 %vm861_vm0, %v860_v0  ;;  %777 = vmatpush3.bf16.msra.mxu1 %v776_v39  ;;  %v779_v0 = vpack.c.bf16 %v525_v40, %v524_v37 }
 0x57d   :  { %778 = vmatprep.subr.bf16.mxu1 %v863_v38 }
 0x580   :  { %780 = vmatpush3.bf16.msra.mxu1 %v779_v0 }
 0x64e   :  { %v468_v28 = vpop.f32.mrb[16].mxu1 }
 0x64f   :  { %v474_v29 = vadd.f32 %v468_v28, %v142_v11  ;;  %v754_v17 = vpop.f32.mrb[17].mxu1 }
 0x650   :  { %v471_v31 = vpop.f32.mrb[18].mxu1 }
 0x651   :  { %801 = vtanh.f32 %v474_v29  ;;  %v755_v32 = vpop.f32.mrb[19].mxu1 }
 0x65b   :  { %v802_v33 = vpop.eup %801 }
 0x65c   :  { %v476_v34 = vpack.c.bf16 %v802_v33, %v802_v33 }
 0x65e   :  { %761 = vmatmul.mubr.msk.bf16.vlgmr.msra.gmra.mrb[16].mxu0 %vm154_vm2, %v476_v34 }
 0x731   :  { %v514_v42 = vpop.f32.mrb[16].mxu0 }
 0x732   :  { %v520_v43 = vadd.f32 %v514_v42, %v145_v41  ;;  %v762_v44 = vpop.f32.mrb[17].mxu0 }
 0x733   :  { %v517_v45 = vpop.f32.mrb[18].mxu0 }
 0x734   :  { %803 = vtanh.f32 %v520_v43  ;;  %v763_v46 = vpop.f32.mrb[19].mxu0 }
 0x73e   :  { %v804_v47 = vpop.eup %803 }
 0x73f   :  { %773 = vmatmul.mubr.msk.f32.vlgmr.msra.gmra.mrb[20].mxu1 %vm154_vm2, %v804_v47 }
 0x812   :  { %v602_v49 = vpop.f32.mrb[20].mxu1 }
 0x813   :  { %v603_v50 = vadd.f32 %v645_v48, %v602_v49  ;;  %v774_v51 = vpop.f32.mrb[21].mxu1 }
 0x815   :  { %606 = vmax.xlane.f32.xlu0 %v603_v50 }
 0x8a2   :  { %v607_v52 = vpop.xlane.xlu0 %606 }
 0x8a3   :  { %v608_v53 = vsub.f32 %v603_v50, %v607_v52 }
 0x8a5   :  { %v609_v30 = vmul.f32 1.442695, %v608_v53 }
 0x8a7   :  { %805 = vpow2.f32 %v609_v30 }
 0x8b1   :  { %v806_v54 = vpop.eup %805 }
 0x8b2   :  { %611 = vadd.xlane.f32.xlu0 %v806_v54 }
 0x93f   :  { %v612_v55 = vpop.xlane.xlu0 %611 }
 0x940   :  { %807 = vlog2.f32 %v612_v55 }
 0x94a   :  { %v808_v56 = vpop.eup %807 }
 0x94b   :  { %v614_v57 = vmul.f32 0.6931472, %v808_v56 }
 0x94d   :  { %v615_v58 = vadd.f32 %v614_v57, %v607_v52 }
 0x94f   :  { %v616_v59 = vsub.f32 %v603_v50, %v615_v58 }
 0x951   :  { %617 = vst [vmem:[#allocation5] sm:$0xff] %v616_v59 }
 0x952   :  { %842 = shalt.err (!%p839_p12)
}
 0x953   :  { %s843_s29 = scalar_lea.hbm %s1072_s6, 128 }
 0x954   :  { %p844_p13 = scmp.ne.s32.totalorder %s1072_s6, %s843_s29  ;;  %p847_p0 = scmp.lt.u32.totalorder %s843_s29, %s1072_s6 }
 0x956   :  { %p849_p1 = pnand %p847_p0, %p844_p13 }
 0x958   :  { %852 = shalt.err (!%p849_p1)
}
 0x959   :  { %627 = dma.vmem_to_hbm [thread:$0]  %s625_s26, 128, %s1072_s6, [#allocation4]  }
 0x95a   :  { %855 = dma.done.wait [#allocation4], 128  }
 0x95b   :  { %856 = vsyncadd [#allocation4], 4294967168 }
 0x95c   :  { %631 = vsyncpa [#allocation3], 1 }
 0x95d   :  { %632 = vsyncpa [#allocation4], 1 }

</bundles_post_ra>
